<compile_context>
chip_gen: v5e
topology: v5e:2x2
jax: 0.10.0
libtpu: 0.0.40
codegen_flags: <defaults>
</compile_context>

<pallas_src>
import jax
import jax.numpy as jnp
from jax.experimental import pallas as pl
from jax.experimental.pallas import tpu as pltpu


def _round_up(n, m):
    return ((n + m - 1) // m) * m


def logistic_kernel(x_ref, w_ref, b_ref, o_ref):
    # x_ref: (F, TB) VMEM  -- features on sublanes, batch on lanes
    # w_ref: (F, 1)  VMEM  -- broadcast across lanes
    # b_ref: (1,)    SMEM  -- scalar bias
    # o_ref: (1, TB) VMEM  -- lane-dense output
    x = x_ref[...]
    w = w_ref[...]
    # Linear: z[b] = sum_f w[f] * x[f, b] + bias  (VPU mul + sublane reduce)
    z = jnp.sum(x * w, axis=0, keepdims=True) + b_ref[0]   # (1, TB) f32
    # Sigmoid: exp on the EUP, reciprocal for the 1/(1+e) step.
    y = pl.reciprocal(1.0 + jnp.exp(-z), approx=False)
    o_ref[...] = y.astype(o_ref.dtype)


def logistic_forward(x, weight, bias, *, block_b=1024):
    """Forward of Logistic: sigmoid(x @ weight.T + bias).

    x: (B, 13) f32; weight: (1, 13) f32 (PyTorch nn.Linear layout); bias: (1,) f32.
    Returns (B, 1) f32 (matching the PyTorch module's output shape).
    """
    B, F = x.shape

    # Lane-dense batch tiling: TB is a multiple of 128, at most block_b.
    tb = min(block_b, _round_up(B, 128))
    b_pad = _round_up(B, tb)

    # Layout plumbing: present x transposed (features on sublanes, batch on
    # lanes) and pad the batch axis up to a multiple of the tile.
    x_t = jnp.transpose(x)                                    # (F, B)
    if b_pad != B:
        x_t = jnp.pad(x_t, ((0, 0), (0, b_pad - B)))          # (F, b_pad)
    w_col = jnp.transpose(weight)                             # (F, 1)
    b_vec = bias.reshape(1)                                   # (1,) scalar in SMEM

    grid = (b_pad // tb,)
    out = pl.pallas_call(
        logistic_kernel,
        out_shape=jax.ShapeDtypeStruct((1, b_pad), x.dtype),
        grid=grid,
        in_specs=[
            pl.BlockSpec((F, tb), lambda i: (0, i)),             # x tile (pipelined)
            pl.BlockSpec((F, 1), lambda i: (0, 0)),              # weight (resident)
            pl.BlockSpec(memory_space=pltpu.MemorySpace.SMEM),   # bias scalar
        ],
        out_specs=pl.BlockSpec((1, tb), lambda i: (0, i)),       # lane-dense out
        compiler_params=pltpu.CompilerParams(
            dimension_semantics=("parallel",)),
    )(x_t, w_col, b_vec)

    # Drop batch padding and match nn.Linear(13, 1)'s (B, 1) output.
    return out[0, :B].reshape(B, 1)


if __name__ == "__main__":
    key = jax.random.PRNGKey(0)
    kx, kw, kb = jax.random.split(key, 3)

    B, F = 8, 13
    x = jax.random.normal(kx, (B, F), dtype=jnp.float32)

    # Deterministic init mimicking nn.Linear(13, 1): U(-1/sqrt(13), 1/sqrt(13))
    bound = 1.0 / jnp.sqrt(jnp.float32(F))
    weight = jax.random.uniform(kw, (1, F), jnp.float32, -bound, bound)
    bias = jax.random.uniform(kb, (1,), jnp.float32, -bound, bound)

    y = jax.block_until_ready(logistic_forward(x, weight, bias))
    y_ref = jax.nn.sigmoid(x @ weight.T + bias)
    assert y.shape == (B, 1)
    assert jnp.allclose(y, y_ref, atol=1e-5, rtol=1e-5)

    # Also exercise multiple grid steps + the padding path with a bigger batch.
    B2 = 300
    x2 = jax.random.normal(kx, (B2, F), dtype=jnp.float32)
    y2 = jax.block_until_ready(logistic_forward(x2, weight, bias, block_b=128))
    y2_ref = jax.nn.sigmoid(x2 @ weight.T + bias)
    assert y2.shape == (B2, 1)
    assert jnp.allclose(y2, y2_ref, atol=1e-5, rtol=1e-5)

    print("KERNEL_OK")
</pallas_src>

<mosaic_0001>
module attributes {stable_mosaic.version = 11 : i64} {
  func.func @logistic_kernel(%arg0: i32, %arg1: memref<13x128xf32, #tpu.memory_space<vmem>>, %arg2: memref<13x1xf32, #tpu.memory_space<vmem>>, %arg3: memref<1xf32, #tpu.memory_space<smem>>, %arg4: memref<1x128xf32, #tpu.memory_space<vmem>>) attributes {dimension_semantics = [#tpu.dimension_semantics<parallel>], iteration_bounds = array<i64: 1>, scalar_prefetch = 0 : i64, scratch_operands = 0 : i64, tpu.core_type = #tpu.core_type<tc>, window_params = [{transform_indices = @transform_0, window_bounds = array<i64: 13, 128>}, {pipeline_mode = #tpu.pipeline_mode<synchronous>, transform_indices = @transform_1, window_bounds = array<i64: 13, 1>}, {transform_indices = @transform_2, window_bounds = array<i64: 1>}, {transform_indices = @transform_3, window_bounds = array<i64: 1, 128>}]} {
    %c0 = arith.constant 0 : index
    %c0_0 = arith.constant 0 : index
    %0 = vector.load %arg1[%c0, %c0_0] : memref<13x128xf32, #tpu.memory_space<vmem>>, vector<13x128xf32>
    %c0_1 = arith.constant 0 : index
    %c0_2 = arith.constant 0 : index
    %1 = vector.load %arg2[%c0_1, %c0_2] : memref<13x1xf32, #tpu.memory_space<vmem>>, vector<13x1xf32>
    %2 = vector.broadcast %1 : vector<13x1xf32> to vector<13x128xf32>
    %3 = arith.mulf %0, %2 : vector<13x128xf32>
    %cst = arith.constant dense<0.000000e+00> : vector<128xf32>
    %4 = vector.multi_reduction <add>, %3, %cst [0] : vector<13x128xf32> to vector<128xf32>
    %5 = vector.shape_cast %4 : vector<128xf32> to vector<1x128xf32>
    %c0_3 = arith.constant 0 : index
    %6 = memref.load %arg3[%c0_3] : memref<1xf32, #tpu.memory_space<smem>>
    %7 = vector.broadcast %6 : f32 to vector<1x128xf32>
    %8 = arith.addf %5, %7 : vector<1x128xf32>
    %cst_4 = arith.constant 0.000000e+00 : f32
    %9 = vector.broadcast %cst_4 : f32 to vector<1x128xf32>
    %10 = arith.subf %9, %8 : vector<1x128xf32>
    %11 = math.exp %10 : vector<1x128xf32>
    %cst_5 = arith.constant 1.000000e+00 : f32
    %12 = vector.broadcast %cst_5 : f32 to vector<1x128xf32>
    %13 = arith.addf %12, %11 : vector<1x128xf32>
    %14 = tpu.reciprocal %13 : vector<1x128xf32> -> vector<1x128xf32>
    %c0_6 = arith.constant 0 : index
    %c0_7 = arith.constant 0 : index
    %15 = vector.load %arg4[%c0_6, %c0_7] : memref<1x128xf32, #tpu.memory_space<vmem>>, vector<1x128xf32>
    tpu.vector_store %arg4[%c0_6, %c0_7], %14 {strides = array<i32>} : memref<1x128xf32, #tpu.memory_space<vmem>>, vector<1x128xf32>,
    return
  }
  func.func @transform_0(%arg0: i32) -> (i32, i32) {
    %c0_i32 = arith.constant 0 : i32
    %c0_i32_0 = arith.constant 0 : i32
    return %c0_i32, %arg0 : i32, i32
  }
  func.func @transform_1(%arg0: i32) -> (i32, i32) {
    %c0_i32 = arith.constant 0 : i32
    %c0_i32_0 = arith.constant 0 : i32
    %c0_i32_1 = arith.constant 0 : i32
    return %c0_i32, %c0_i32_0 : i32, i32
  }
  func.func @transform_2(%arg0: i32) -> i32 {
    %c0_i32 = arith.constant 0 : i32
    %c0_i32_0 = arith.constant 0 : i32
    return %c0_i32 : i32
  }
  func.func @transform_3(%arg0: i32) -> (i32, i32) {
    %c0_i32 = arith.constant 0 : i32
    %c0_i32_0 = arith.constant 0 : i32
    return %c0_i32, %arg0 : i32, i32
  }
}

</mosaic_0001>

<bundles_post_ra>
// kernel: tpu_custom_call.1
= control target key start
LH: loop header
LB: loop body
LE: loop exit
PB: predicated region body
PF: predicated region fallthrough
CT: control target
= control target key end

     0   :  { %v112_v1 = vmov 0   ;;  %s152_s0 = inlined_call_operand.vmem [shape: f32[13,128], index: 0, kind: input, shape index: {}]   ;;  %s153_s1 = inlined_call_operand.vmem [shape: f32[13,1], index: 1, kind: input, shape index: {}]   ;;  %s154_s2 = inlined_call_operand.<no memory space> [shape: f32[1], index: 2, kind: input, shape index: {}]   ;;  %s155_s3 = inlined_call_operand.hbm [shape: f32[1,128], index: 3, kind: output, shape index: {}]  }
   0x1   :  { %v19_v0 = vld [vmem:[%s153_s1 + $0x8] sm:$0x1f]  ;;  %81 = vset.pattern.permute.xlu0 %v112_v1 }
   0x2   :  { %9 = vsyncpa [#allocation4], 0  ;;  %27 = vperm.xlu0 %81, %v19_v0   ;;  %v18_v2 = vld [vmem:[%s153_s1] sm:$0xff]  ;;  %v17_v4 = vld [vmem:[%s152_s0 + $0x8] sm:$0x1f]  ;;  %vm32_vm0 = vcmask 1044480   ;;  %v42_v16 = vstv %s154_s2 }
   0x3   :  { %v16_v6 = vld [vmem:[%s152_s0] sm:$0xff]  ;;  %s113_s0 = smov [#allocation3]   ;;  %s70_s2 = sshll.u32 %s155_s3, 4  ;;  %s71_s2 = int_to_ptr.hbm [resolvable:$true] %s70_s2 }
   0x4   :  { %s68_s21 = sshll.u32 %s113_s0, 4  ;;  %s69_s21 = int_to_ptr.vmem [resolvable:$true] %s68_s21 }
   0xa   :  { %22 = vperm.xlu0 %81, %v18_v2  }
  0x74   :  { %v28_v3 = vpop.permute.xlu0 %27 }
  0x75   :  { %v31_v5 = vmul.f32 %v28_v3, %v17_v4 }
  0x77   :  { %v33_v9 = vsel %vm32_vm0, %v31_v5, 0.0 }
  0x7c   :  { %v23_v7 = vpop.permute.xlu0 %22 }
  0x7d   :  { %v30_v8 = vmul.f32 %v23_v7, %v16_v6 }
  0x7f   :  { %v34_v10 = vadd.f32 %v33_v9, %v30_v8 }
  0x81   :  { %v35_v11 = vrot.slane %v34_v10, 4 }
  0x83   :  { %v36_v12 = vadd.f32 %v35_v11, %v34_v10 }
  0x85   :  { %v37_v13 = vrot.slane %v36_v12, 2 }
  0x87   :  { %v38_v14 = vadd.f32 %v37_v13, %v36_v12 }
  0x89   :  { %v39_v15 = vrot.slane %v38_v14, 1 }
  0x8b   :  { %v40_v17 = vadd.f32 %v39_v15, %v38_v14 }
  0x8d   :  { %v43_v18 = vadd.f32 %v42_v16, %v40_v17 }
  0x8f   :  { %v44_v19 = vsub.f32 0.0, %v43_v18 }
  0x91   :  { %v45_v20 = vmul.f32 1.442695, %v44_v19 }
  0x93   :  { %82 = vpow2.f32 %v45_v20 }
  0x99   :  { %v83_v21 = vpop.eup %82 }
  0x9a   :  { %v47_v22 = vadd.f32 1.0, %v83_v21 }
  0x9c   :  { %84 = vrcp.f32 %v47_v22  ;;  %v59_v26 = vand.u32 2147483648, %v47_v22  ;;  %v57_v28 = vand.u32 2147483647, %v47_v22  ;;  %vm53_vm2 = vweird.f32 %v47_v22 }
  0x9e   :  { %v60_v30 = vor.u32 1.1754944e-38, %v59_v26  ;;  %vm58_vm4 = vcmp.eq.f32.partialorder %v57_v28, 8.507059e+37 }
  0xa2   :  { %v85_v23 = vpop.eup %84 }
  0xa3   :  { %v49_v24 = vmul.f32 %v85_v23, %v47_v22  ;;  %vm54_vm1 = vweird.f32 %v85_v23 }
  0xa4   :  { %vm55_vm3 = vmor %vm53_vm2, %vm54_vm1 }
  0xa5   :  { %v50_v25 = vsub.f32 1.0, %v49_v24 }
  0xa7   :  { %v51_v27 = vmul.f32 %v85_v23, %v50_v25 }
  0xa9   :  { %v52_v29 = vadd.f32 %v85_v23, %v51_v27 }
  0xab   :  { %v56_v31 = vsel %vm55_vm3, %v85_v23, %v52_v29 }
  0xac   :  { %v61_v32 = vsel %vm58_vm4, %v60_v30, %v56_v31 }
  0xad   :  { %62 = vst [vmem:[#allocation3] sm:$0x1] %v61_v32 }
  0xae   :  { %73 = dma.vmem_to_hbm [thread:$0]  %s69_s21, 16, %s71_s2, [#allocation4]  }
  0xaf   :  { %110 = dma.done.wait [#allocation4], 16  }
  0xb0   :  { %111 = vsyncadd [#allocation4], 4294967280 }
  0xb1   :  { %78 = vsyncpa [#allocation4], 1 }

</bundles_post_ra>
